<compile_context>
chip_gen: v5e
topology: v5e:2x2
jax: 0.10.0
libtpu: 0.0.40
codegen_flags: <defaults>
</compile_context>

<pallas_src>
import functools

import jax
import jax.numpy as jnp
import numpy as np
from jax.experimental import pallas as pl
from jax.experimental.pallas import tpu as pltpu

BN_EPS = 1e-5


# ----------------------------------------------------------------------------
# Static boundary masks for conv2's in-kernel im2col (padding=1, stride=1).
# ----------------------------------------------------------------------------
def _conv2_boundary_masks(N, H1, W1):
    """(9, N*H1*W1) f32: 1 where tap (kh,kw)'s source pixel is in-bounds."""
    HW = H1 * W1
    p = np.arange(N * HW)
    oh = (p % HW) // W1
    ow = p % W1
    rows = []
    for kh in range(3):
        for kw in range(3):
            dh, dw = kh - 1, kw - 1
            valid = ((oh + dh >= 0) & (oh + dh < H1) &
                     (ow + dw >= 0) & (ow + dw < W1))
            rows.append(valid.astype(np.float32))
    return jnp.asarray(np.stack(rows, axis=0))


# ----------------------------------------------------------------------------
# Fused residual-block kernel (single pallas_call, everything in VMEM)
# ----------------------------------------------------------------------------
def _build_fused_kernel(*, N, H1, W1, Cin, C2, use_1x1conv, eps):
    HW = H1 * W1
    Mtot = N * HW
    inv_cnt = 1.0 / float(Mtot)
    taps = [(kh, kw) for kh in range(3) for kw in range(3)]

    def kernel(*refs):
        (im1_ref, w1_ref, g1_ref, be1_ref,
         w2_ref, g2_ref, be2_ref, m2_ref) = refs[:8]
        pos = 8
        if use_1x1conv:
            w3_ref, b3_ref = refs[pos:pos + 2]
            pos += 2
        out_ref = refs[pos]          # (N, C2, HW)  lane-dense output
        im2_ref = refs[pos + 1]      # VMEM scratch (9*C2, Mtot) for conv2 im2col

        # ---- conv1: one channel-major MXU matmul over the prebuilt im2col ----
        acc1 = jnp.dot(w1_ref[...], im1_ref[...],
                       preferred_element_type=jnp.float32)        # (C2, Mtot)
        # conv1 bias omitted: cancels exactly under training-mode BatchNorm.

        # ---- bn1: single-pass stats (sum, sumsq), folded affine, ReLU --------
        m1 = jnp.sum(acc1, axis=1, keepdims=True) * inv_cnt        # (C2, 1)
        q1 = jnp.sum(acc1 * acc1, axis=1, keepdims=True) * inv_cnt
        var1 = q1 - m1 * m1
        scale1 = g1_ref[...] * jax.lax.rsqrt(var1 + eps)
        shift1 = be1_ref[...] - m1 * scale1
        y1 = jnp.maximum(acc1 * scale1 + shift1, 0.0)               # (C2, Mtot)

        # ---- conv2 im2col: lane-roll of y1 + static boundary masks -----------
        for t, (kh, kw) in enumerate(taps):
            d = (kh - 1) * W1 + (kw - 1)
            shifted = y1 if d == 0 else pltpu.roll(y1, shift=(-d) % Mtot, axis=1)
            im2_ref[pl.ds(t * C2, C2), :] = shifted * m2_ref[pl.ds(t, 1), :]

        # ---- conv2: one MXU matmul, K = 9*C2 ---------------------------------
        acc2 = jnp.dot(w2_ref[...], im2_ref[...],
                       preferred_element_type=jnp.float32)          # (C2, Mtot)
        # conv2 bias omitted (same BatchNorm cancellation).

        # ---- bn2: single-pass stats + folded affine --------------------------
        m2 = jnp.sum(acc2, axis=1, keepdims=True) * inv_cnt
        q2 = jnp.sum(acc2 * acc2, axis=1, keepdims=True) * inv_cnt
        var2 = q2 - m2 * m2
        scale2 = g2_ref[...] * jax.lax.rsqrt(var2 + eps)
        shift2 = be2_ref[...] - m2 * scale2
        y2 = acc2 * scale2 + shift2

        # ---- shortcut: centre tap of conv1's im2col == strided input pixels --
        x_center = im1_ref[pl.ds(4 * Cin, Cin), :]                  # (Cin, Mtot)
        if use_1x1conv:
            sc = jnp.dot(w3_ref[...], x_center,
                         preferred_element_type=jnp.float32) + b3_ref[...]
        else:
            sc = x_center                                           # Cin == C2
        res = jnp.maximum(y2 + sc, 0.0)                             # (C2, Mtot)

        # ---- lane-dense stores: one (C2, HW) slab per sample (no XLA transpose)
        for n in range(N):
            out_ref[n, :, :] = res[:, n * HW:(n + 1) * HW]

    return kernel


# ----------------------------------------------------------------------------
# Wrapper: input-only layout prep (pad + im2col of the module input) + one call
# ----------------------------------------------------------------------------
def residual_forward(x_nchw, params, *, use_1x1conv, strides):
    """Fused Pallas forward. x_nchw: (N, Cin, H, W) f32 -> (N, C2, Ho, Wo)."""
    s = int(strides)
    N, Cin, H, W = x_nchw.shape
    C2 = params["w1"].shape[-1]
    assert H % s == 0 and W % s == 0, "spatial dims must be divisible by stride"
    H1, W1 = H // s, W // s
    HW = H1 * W1
    Mtot = N * HW

    x = x_nchw.astype(jnp.float32)
    xp = jnp.pad(x, ((0, 0), (0, 0), (1, 1), (1, 1)))

    # conv1 im2col, channel-major: row = tap*Cin + ci, col = n*HW + oh*W1 + ow.
    tap_slabs = []
    for kh in range(3):
        for kw in range(3):
            t = xp[:, :, kh:kh + (H1 - 1) * s + 1:s, kw:kw + (W1 - 1) * s + 1:s]
            tap_slabs.append(jnp.transpose(t, (1, 0, 2, 3)).reshape(Cin, Mtot))
    im1 = jnp.concatenate(tap_slabs, axis=0)                       # (9*Cin, Mtot)

    # Weights reshaped channel-major in the wrapper (HWIO -> (Cout, 9*Cin)).
    w1cm = jnp.transpose(params["w1"], (3, 0, 1, 2)).reshape(C2, 9 * Cin)
    w2cm = jnp.transpose(params["w2"], (3, 0, 1, 2)).reshape(C2, 9 * C2)
    mask2 = _conv2_boundary_masks(N, H1, W1)                        # (9, Mtot)

    args = [im1, w1cm,
            params["g1"].reshape(C2, 1), params["be1"].reshape(C2, 1),
            w2cm,
            params["g2"].reshape(C2, 1), params["be2"].reshape(C2, 1),
            mask2]
    if use_1x1conv:
        args += [params["w3"].T, params["b3"].reshape(C2, 1)]       # (C2,Cin),(C2,1)
    else:
        assert Cin == C2 and s == 1, "identity shortcut needs matching shapes"

    kernel = _build_fused_kernel(N=N, H1=H1, W1=W1, Cin=Cin, C2=C2,
                                 use_1x1conv=use_1x1conv, eps=BN_EPS)

    out_shape = jax.ShapeDtypeStruct((N, C2, HW), jnp.float32)
    scratch = pltpu.VMEM((9 * C2, Mtot), jnp.float32)

    # VMEM budget sized from the actual buffers (review item), generous headroom.
    total_bytes = sum(int(np.prod(a.shape)) * jnp.dtype(a.dtype).itemsize
                      for a in args)
    total_bytes += N * C2 * HW * 4 + 9 * C2 * Mtot * 4
    vmem_limit = int(min(100 << 20, max(16 << 20, 4 * total_bytes)))

    vmem = pl.BlockSpec(memory_space=pltpu.MemorySpace.VMEM)
    out_flat = pl.pallas_call(
        kernel,
        out_shape=out_shape,
        in_specs=[vmem] * len(args),
        out_specs=vmem,
        scratch_shapes=[scratch],
        compiler_params=pltpu.CompilerParams(vmem_limit_bytes=vmem_limit),
    )(*args)

    # (N, C2, H1*W1) -> (N, C2, H1, W1): pure reshape, no transpose pass.
    return out_flat.reshape(N, C2, H1, W1)


# ----------------------------------------------------------------------------
# Plain-JAX (XLA) reference — includes conv biases b1/b2 to demonstrate that
# dropping them inside the Pallas kernel is exact under training-mode BN.
# ----------------------------------------------------------------------------
def residual_reference(x_nchw, params, *, use_1x1conv, strides):
    x = jnp.transpose(x_nchw, (0, 2, 3, 1)).astype(jnp.float32)
    dn = ("NHWC", "HWIO", "NHWC")

    def conv(inp, w, b, s, pad):
        o = jax.lax.conv_general_dilated(inp, w, (s, s), pad, dimension_numbers=dn)
        return o + b.reshape(1, 1, 1, -1)

    def bn(inp, g, be):
        m = jnp.mean(inp, axis=(0, 1, 2), keepdims=True)
        v = jnp.mean((inp - m) ** 2, axis=(0, 1, 2), keepdims=True)
        return (inp - m) * jax.lax.rsqrt(v + BN_EPS) * g.reshape(1, 1, 1, -1) \
            + be.reshape(1, 1, 1, -1)

    y = conv(x, params["w1"], params["b1"], strides, ((1, 1), (1, 1)))
    y = jax.nn.relu(bn(y, params["g1"], params["be1"]))
    y = conv(y, params["w2"], params["b2"], 1, ((1, 1), (1, 1)))
    y = bn(y, params["g2"], params["be2"])
    if use_1x1conv:
        sc = conv(x, params["w3"].reshape(1, 1, *params["w3"].shape),
                  params["b3"], strides, ((0, 0), (0, 0)))
    else:
        sc = x
    return jnp.transpose(jax.nn.relu(y + sc), (0, 3, 1, 2))


def init_params(key, cin, cout, use_1x1conv):
    ks = jax.random.split(key, 6)
    p = {
        "w1": 0.1 * jax.random.normal(ks[0], (3, 3, cin, cout), jnp.float32),
        "b1": 0.1 * jax.random.normal(ks[1], (cout,), jnp.float32),
        "w2": 0.1 * jax.random.normal(ks[2], (3, 3, cout, cout), jnp.float32),
        "b2": 0.1 * jax.random.normal(ks[3], (cout,), jnp.float32),
        "g1": jnp.ones((cout,), jnp.float32),
        "be1": jnp.zeros((cout,), jnp.float32),
        "g2": jnp.ones((cout,), jnp.float32),
        "be2": jnp.zeros((cout,), jnp.float32),
    }
    if use_1x1conv:
        p["w3"] = 0.1 * jax.random.normal(ks[4], (cin, cout), jnp.float32)
        p["b3"] = 0.1 * jax.random.normal(ks[5], (cout,), jnp.float32)
    return p


if __name__ == "__main__":
    key = jax.random.PRNGKey(0)
    kx, kp1, kp2 = jax.random.split(key, 3)

    # Config A: identity shortcut (input_channels == num_channels, stride 1).
    x = jax.random.normal(kx, (2, 4, 16, 16), jnp.float32)  # NCHW
    params_a = init_params(kp1, 4, 4, use_1x1conv=False)
    fwd_a = jax.jit(functools.partial(residual_forward,
                                      use_1x1conv=False, strides=1))
    out_a = jax.block_until_ready(fwd_a(x, params_a))
    ref_a = residual_reference(x, params_a, use_1x1conv=False, strides=1)
    np.testing.assert_allclose(np.asarray(out_a), np.asarray(ref_a),
                               rtol=1e-4, atol=1e-4)

    # Config B: projection shortcut (1x1 conv, stride 2, channels 4 -> 8).
    params_b = init_params(kp2, 4, 8, use_1x1conv=True)
    fwd_b = jax.jit(functools.partial(residual_forward,
                                      use_1x1conv=True, strides=2))
    out_b = jax.block_until_ready(fwd_b(x, params_b))
    ref_b = residual_reference(x, params_b, use_1x1conv=True, strides=2)
    np.testing.assert_allclose(np.asarray(out_b), np.asarray(ref_b),
                               rtol=1e-4, atol=1e-4)

    assert out_a.shape == (2, 4, 16, 16)
    assert out_b.shape == (2, 8, 8, 8)
    print("KERNEL_OK")
</pallas_src>

<mosaic_0001>
module attributes {stable_mosaic.version = 11 : i64} {
  func.func @kernel(%arg0: memref<36x512xf32, #tpu.memory_space<vmem>>, %arg1: memref<4x36xf32, #tpu.memory_space<vmem>>, %arg2: memref<4x1xf32, #tpu.memory_space<vmem>>, %arg3: memref<4x1xf32, #tpu.memory_space<vmem>>, %arg4: memref<4x36xf32, #tpu.memory_space<vmem>>, %arg5: memref<4x1xf32, #tpu.memory_space<vmem>>, %arg6: memref<4x1xf32, #tpu.memory_space<vmem>>, %arg7: memref<9x512xf32, #tpu.memory_space<vmem>>, %arg8: memref<2x4x256xf32, #tpu.memory_space<vmem>>, %arg9: memref<36x512xf32, #tpu.memory_space<vmem>>) attributes {dimension_semantics = [], scalar_prefetch = 0 : i64, scratch_operands = 1 : i64, tpu.core_type = #tpu.core_type<tc>} {
    %c0 = arith.constant 0 : index
    %c0_0 = arith.constant 0 : index
    %0 = vector.load %arg1[%c0, %c0_0] : memref<4x36xf32, #tpu.memory_space<vmem>>, vector<4x36xf32>
    %c0_1 = arith.constant 0 : index
    %c0_2 = arith.constant 0 : index
    %1 = vector.load %arg0[%c0_1, %c0_2] : memref<36x512xf32, #tpu.memory_space<vmem>>, vector<36x512xf32>
    %cst = arith.constant dense<0.000000e+00> : vector<4x512xf32>
    %2 = tpu.matmul %0, %1, %cst {dimension_numbers = #tpu.dot_dimension_numbers<[1], [0], [0], [1], [0, 0, 1, 1], [], []>} : vector<4x36xf32>, vector<36x512xf32>, vector<4x512xf32> -> vector<4x512xf32>
    %cst_3 = arith.constant dense<0.000000e+00> : vector<4xf32>
    %3 = vector.multi_reduction <add>, %2, %cst_3 [1] : vector<4x512xf32> to vector<4xf32>
    %4 = vector.shape_cast %3 : vector<4xf32> to vector<4x1xf32>
    %cst_4 = arith.constant 0.001953125 : f32
    %5 = vector.broadcast %cst_4 : f32 to vector<4x1xf32>
    %6 = arith.mulf %4, %5 : vector<4x1xf32>
    %7 = arith.mulf %2, %2 : vector<4x512xf32>
    %cst_5 = arith.constant dense<0.000000e+00> : vector<4xf32>
    %8 = vector.multi_reduction <add>, %7, %cst_5 [1] : vector<4x512xf32> to vector<4xf32>
    %9 = vector.shape_cast %8 : vector<4xf32> to vector<4x1xf32>
    %cst_6 = arith.constant 0.001953125 : f32
    %10 = vector.broadcast %cst_6 : f32 to vector<4x1xf32>
    %11 = arith.mulf %9, %10 : vector<4x1xf32>
    %12 = arith.mulf %6, %6 : vector<4x1xf32>
    %13 = arith.subf %11, %12 : vector<4x1xf32>
    %c0_7 = arith.constant 0 : index
    %c0_8 = arith.constant 0 : index
    %14 = vector.load %arg2[%c0_7, %c0_8] : memref<4x1xf32, #tpu.memory_space<vmem>>, vector<4x1xf32>
    %cst_9 = arith.constant 9.99999974E-6 : f32
    %15 = vector.broadcast %cst_9 : f32 to vector<4x1xf32>
    %16 = arith.addf %13, %15 : vector<4x1xf32>
    %17 = math.rsqrt %16 : vector<4x1xf32>
    %18 = arith.mulf %14, %17 : vector<4x1xf32>
    %c0_10 = arith.constant 0 : index
    %c0_11 = arith.constant 0 : index
    %19 = vector.load %arg3[%c0_10, %c0_11] : memref<4x1xf32, #tpu.memory_space<vmem>>, vector<4x1xf32>
    %20 = arith.mulf %6, %18 : vector<4x1xf32>
    %21 = arith.subf %19, %20 : vector<4x1xf32>
    %22 = vector.broadcast %18 : vector<4x1xf32> to vector<4x512xf32>
    %23 = arith.mulf %2, %22 : vector<4x512xf32>
    %24 = vector.broadcast %21 : vector<4x1xf32> to vector<4x512xf32>
    %25 = arith.addf %23, %24 : vector<4x512xf32>
    %cst_12 = arith.constant 0.000000e+00 : f32
    %26 = vector.broadcast %cst_12 : f32 to vector<4x512xf32>
    %27 = arith.maximumf %25, %26 : vector<4x512xf32>
    %c17_i32 = arith.constant 17 : i32
    %28 = tpu.dynamic_rotate %27 by %c17_i32 dim 1 : vector<4x512xf32>, i32 -> vector<4x512xf32>
    %c0_13 = arith.constant 0 : index
    %c0_14 = arith.constant 0 : index
    %29 = vector.load %arg7[%c0_13, %c0_14] : memref<9x512xf32, #tpu.memory_space<vmem>>, vector<1x512xf32>
    %30 = vector.broadcast %29 : vector<1x512xf32> to vector<4x512xf32>
    %31 = arith.mulf %28, %30 : vector<4x512xf32>
    %c0_15 = arith.constant 0 : index
    %c0_16 = arith.constant 0 : index
    %32 = vector.load %arg9[%c0_15, %c0_16] : memref<36x512xf32, #tpu.memory_space<vmem>>, vector<4x512xf32>
    tpu.vector_store %arg9[%c0_15, %c0_16], %31 {strides = array<i32>} : memref<36x512xf32, #tpu.memory_space<vmem>>, vector<4x512xf32>,
    %c16_i32 = arith.constant 16 : i32
    %33 = tpu.dynamic_rotate %27 by %c16_i32 dim 1 : vector<4x512xf32>, i32 -> vector<4x512xf32>
    %c1 = arith.constant 1 : index
    %c0_17 = arith.constant 0 : index
    %34 = vector.load %arg7[%c1, %c0_17] : memref<9x512xf32, #tpu.memory_space<vmem>>, vector<1x512xf32>
    %35 = vector.broadcast %34 : vector<1x512xf32> to vector<4x512xf32>
    %36 = arith.mulf %33, %35 : vector<4x512xf32>
    %c4 = arith.constant 4 : index
    %c0_18 = arith.constant 0 : index
    %37 = vector.load %arg9[%c4, %c0_18] : memref<36x512xf32, #tpu.memory_space<vmem>>, vector<4x512xf32>
    tpu.vector_store %arg9[%c4, %c0_18], %36 {strides = array<i32>} : memref<36x512xf32, #tpu.memory_space<vmem>>, vector<4x512xf32>,
    %c15_i32 = arith.constant 15 : i32
    %38 = tpu.dynamic_rotate %27 by %c15_i32 dim 1 : vector<4x512xf32>, i32 -> vector<4x512xf32>
    %c2 = arith.constant 2 : index
    %c0_19 = arith.constant 0 : index
    %39 = vector.load %arg7[%c2, %c0_19] : memref<9x512xf32, #tpu.memory_space<vmem>>, vector<1x512xf32>
    %40 = vector.broadcast %39 : vector<1x512xf32> to vector<4x512xf32>
    %41 = arith.mulf %38, %40 : vector<4x512xf32>
    %c8 = arith.constant 8 : index
    %c0_20 = arith.constant 0 : index
    %42 = vector.load %arg9[%c8, %c0_20] : memref<36x512xf32, #tpu.memory_space<vmem>>, vector<4x512xf32>
    tpu.vector_store %arg9[%c8, %c0_20], %41 {strides = array<i32>} : memref<36x512xf32, #tpu.memory_space<vmem>>, vector<4x512xf32>,
    %c1_i32 = arith.constant 1 : i32
    %43 = tpu.dynamic_rotate %27 by %c1_i32 dim 1 : vector<4x512xf32>, i32 -> vector<4x512xf32>
    %c3 = arith.constant 3 : index
    %c0_21 = arith.constant 0 : index
    %44 = vector.load %arg7[%c3, %c0_21] : memref<9x512xf32, #tpu.memory_space<vmem>>, vector<1x512xf32>
    %45 = vector.broadcast %44 : vector<1x512xf32> to vector<4x512xf32>
    %46 = arith.mulf %43, %45 : vector<4x512xf32>
    %c12 = arith.constant 12 : index
    %c0_22 = arith.constant 0 : index
    %47 = vector.load %arg9[%c12, %c0_22] : memref<36x512xf32, #tpu.memory_space<vmem>>, vector<4x512xf32>
    tpu.vector_store %arg9[%c12, %c0_22], %46 {strides = array<i32>} : memref<36x512xf32, #tpu.memory_space<vmem>>, vector<4x512xf32>,
    %c4_23 = arith.constant 4 : index
    %c0_24 = arith.constant 0 : index
    %48 = vector.load %arg7[%c4_23, %c0_24] : memref<9x512xf32, #tpu.memory_space<vmem>>, vector<1x512xf32>
    %49 = vector.broadcast %48 : vector<1x512xf32> to vector<4x512xf32>
    %50 = arith.mulf %27, %49 : vector<4x512xf32>
    %c16 = arith.constant 16 : index
    %c0_25 = arith.constant 0 : index
    %51 = vector.load %arg9[%c16, %c0_25] : memref<36x512xf32, #tpu.memory_space<vmem>>, vector<4x512xf32>
    tpu.vector_store %arg9[%c16, %c0_25], %50 {strides = array<i32>} : memref<36x512xf32, #tpu.memory_space<vmem>>, vector<4x512xf32>,
    %c511_i32 = arith.constant 511 : i32
    %52 = tpu.dynamic_rotate %27 by %c511_i32 dim 1 : vector<4x512xf32>, i32 -> vector<4x512xf32>
    %c5 = arith.constant 5 : index
    %c0_26 = arith.constant 0 : index
    %53 = vector.load %arg7[%c5, %c0_26] : memref<9x512xf32, #tpu.memory_space<vmem>>, vector<1x512xf32>
    %54 = vector.broadcast %53 : vector<1x512xf32> to vector<4x512xf32>
    %55 = arith.mulf %52, %54 : vector<4x512xf32>
    %c20 = arith.constant 20 : index
    %c0_27 = arith.constant 0 : index
    %56 = vector.load %arg9[%c20, %c0_27] : memref<36x512xf32, #tpu.memory_space<vmem>>, vector<4x512xf32>
    tpu.vector_store %arg9[%c20, %c0_27], %55 {strides = array<i32>} : memref<36x512xf32, #tpu.memory_space<vmem>>, vector<4x512xf32>,
    %c497_i32 = arith.constant 497 : i32
    %57 = tpu.dynamic_rotate %27 by %c497_i32 dim 1 : vector<4x512xf32>, i32 -> vector<4x512xf32>
    %c6 = arith.constant 6 : index
    %c0_28 = arith.constant 0 : index
    %58 = vector.load %arg7[%c6, %c0_28] : memref<9x512xf32, #tpu.memory_space<vmem>>, vector<1x512xf32>
    %59 = vector.broadcast %58 : vector<1x512xf32> to vector<4x512xf32>
    %60 = arith.mulf %57, %59 : vector<4x512xf32>
    %c24 = arith.constant 24 : index
    %c0_29 = arith.constant 0 : index
    %61 = vector.load %arg9[%c24, %c0_29] : memref<36x512xf32, #tpu.memory_space<vmem>>, vector<4x512xf32>
    tpu.vector_store %arg9[%c24, %c0_29], %60 {strides = array<i32>} : memref<36x512xf32, #tpu.memory_space<vmem>>, vector<4x512xf32>,
    %c496_i32 = arith.constant 496 : i32
    %62 = tpu.dynamic_rotate %27 by %c496_i32 dim 1 : vector<4x512xf32>, i32 -> vector<4x512xf32>
    %c7 = arith.constant 7 : index
    %c0_30 = arith.constant 0 : index
    %63 = vector.load %arg7[%c7, %c0_30] : memref<9x512xf32, #tpu.memory_space<vmem>>, vector<1x512xf32>
    %64 = vector.broadcast %63 : vector<1x512xf32> to vector<4x512xf32>
    %65 = arith.mulf %62, %64 : vector<4x512xf32>
    %c28 = arith.constant 28 : index
    %c0_31 = arith.constant 0 : index
    %66 = vector.load %arg9[%c28, %c0_31] : memref<36x512xf32, #tpu.memory_space<vmem>>, vector<4x512xf32>
    tpu.vector_store %arg9[%c28, %c0_31], %65 {strides = array<i32>} : memref<36x512xf32, #tpu.memory_space<vmem>>, vector<4x512xf32>,
    %c495_i32 = arith.constant 495 : i32
    %67 = tpu.dynamic_rotate %27 by %c495_i32 dim 1 : vector<4x512xf32>, i32 -> vector<4x512xf32>
    %c8_32 = arith.constant 8 : index
    %c0_33 = arith.constant 0 : index
    %68 = vector.load %arg7[%c8_32, %c0_33] : memref<9x512xf32, #tpu.memory_space<vmem>>, vector<1x512xf32>
    %69 = vector.broadcast %68 : vector<1x512xf32> to vector<4x512xf32>
    %70 = arith.mulf %67, %69 : vector<4x512xf32>
    %c32 = arith.constant 32 : index
    %c0_34 = arith.constant 0 : index
    %71 = vector.load %arg9[%c32, %c0_34] : memref<36x512xf32, #tpu.memory_space<vmem>>, vector<4x512xf32>
    tpu.vector_store %arg9[%c32, %c0_34], %70 {strides = array<i32>} : memref<36x512xf32, #tpu.memory_space<vmem>>, vector<4x512xf32>,
    %c0_35 = arith.constant 0 : index
    %c0_36 = arith.constant 0 : index
    %72 = vector.load %arg4[%c0_35, %c0_36] : memref<4x36xf32, #tpu.memory_space<vmem>>, vector<4x36xf32>
    %c0_37 = arith.constant 0 : index
    %c0_38 = arith.constant 0 : index
    %73 = vector.load %arg9[%c0_37, %c0_38] : memref<36x512xf32, #tpu.memory_space<vmem>>, vector<36x512xf32>
    %cst_39 = arith.constant dense<0.000000e+00> : vector<4x512xf32>
    %74 = tpu.matmul %72, %73, %cst_39 {dimension_numbers = #tpu.dot_dimension_numbers<[1], [0], [0], [1], [0, 0, 1, 1], [], []>} : vector<4x36xf32>, vector<36x512xf32>, vector<4x512xf32> -> vector<4x512xf32>
    %cst_40 = arith.constant dense<0.000000e+00> : vector<4xf32>
    %75 = vector.multi_reduction <add>, %74, %cst_40 [1] : vector<4x512xf32> to vector<4xf32>
    %76 = vector.shape_cast %75 : vector<4xf32> to vector<4x1xf32>
    %cst_41 = arith.constant 0.001953125 : f32
    %77 = vector.broadcast %cst_41 : f32 to vector<4x1xf32>
    %78 = arith.mulf %76, %77 : vector<4x1xf32>
    %79 = arith.mulf %74, %74 : vector<4x512xf32>
    %cst_42 = arith.constant dense<0.000000e+00> : vector<4xf32>
    %80 = vector.multi_reduction <add>, %79, %cst_42 [1] : vector<4x512xf32> to vector<4xf32>
    %81 = vector.shape_cast %80 : vector<4xf32> to vector<4x1xf32>
    %cst_43 = arith.constant 0.001953125 : f32
    %82 = vector.broadcast %cst_43 : f32 to vector<4x1xf32>
    %83 = arith.mulf %81, %82 : vector<4x1xf32>
    %84 = arith.mulf %78, %78 : vector<4x1xf32>
    %85 = arith.subf %83, %84 : vector<4x1xf32>
    %c0_44 = arith.constant 0 : index
    %c0_45 = arith.constant 0 : index
    %86 = vector.load %arg5[%c0_44, %c0_45] : memref<4x1xf32, #tpu.memory_space<vmem>>, vector<4x1xf32>
    %cst_46 = arith.constant 9.99999974E-6 : f32
    %87 = vector.broadcast %cst_46 : f32 to vector<4x1xf32>
    %88 = arith.addf %85, %87 : vector<4x1xf32>
    %89 = math.rsqrt %88 : vector<4x1xf32>
    %90 = arith.mulf %86, %89 : vector<4x1xf32>
    %c0_47 = arith.constant 0 : index
    %c0_48 = arith.constant 0 : index
    %91 = vector.load %arg6[%c0_47, %c0_48] : memref<4x1xf32, #tpu.memory_space<vmem>>, vector<4x1xf32>
    %92 = arith.mulf %78, %90 : vector<4x1xf32>
    %93 = arith.subf %91, %92 : vector<4x1xf32>
    %94 = vector.broadcast %90 : vector<4x1xf32> to vector<4x512xf32>
    %95 = arith.mulf %74, %94 : vector<4x512xf32>
    %96 = vector.broadcast %93 : vector<4x1xf32> to vector<4x512xf32>
    %97 = arith.addf %95, %96 : vector<4x512xf32>
    %c16_49 = arith.constant 16 : index
    %c0_50 = arith.constant 0 : index
    %98 = vector.load %arg0[%c16_49, %c0_50] : memref<36x512xf32, #tpu.memory_space<vmem>>, vector<4x512xf32>
    %99 = arith.addf %97, %98 : vector<4x512xf32>
    %cst_51 = arith.constant 0.000000e+00 : f32
    %100 = vector.broadcast %cst_51 : f32 to vector<4x512xf32>
    %101 = arith.maximumf %99, %100 : vector<4x512xf32>
    %102 = vector.extract_strided_slice %101 {offsets = [0, 0], sizes = [4, 256], strides = [1, 1]} : vector<4x512xf32> to vector<4x256xf32>
    %c0_52 = arith.constant 0 : index
    %c0_53 = arith.constant 0 : index
    %c0_54 = arith.constant 0 : index
    %103 = vector.load %arg8[%c0_52, %c0_53, %c0_54] : memref<2x4x256xf32, #tpu.memory_space<vmem>>, vector<1x4x256xf32>
    %104 = vector.shape_cast %103 : vector<1x4x256xf32> to vector<4x256xf32>
    %105 = vector.shape_cast %102 : vector<4x256xf32> to vector<1x4x256xf32>
    tpu.vector_store %arg8[%c0_52, %c0_53, %c0_54], %105 {strides = array<i32>} : memref<2x4x256xf32, #tpu.memory_space<vmem>>, vector<1x4x256xf32>,
    %106 = vector.extract_strided_slice %101 {offsets = [0, 256], sizes = [4, 256], strides = [1, 1]} : vector<4x512xf32> to vector<4x256xf32>
    %c1_55 = arith.constant 1 : index
    %c0_56 = arith.constant 0 : index
    %c0_57 = arith.constant 0 : index
    %107 = vector.load %arg8[%c1_55, %c0_56, %c0_57] : memref<2x4x256xf32, #tpu.memory_space<vmem>>, vector<1x4x256xf32>
    %108 = vector.shape_cast %107 : vector<1x4x256xf32> to vector<4x256xf32>
    %109 = vector.shape_cast %106 : vector<4x256xf32> to vector<1x4x256xf32>
    tpu.vector_store %arg8[%c1_55, %c0_56, %c0_57], %109 {strides = array<i32>} : memref<2x4x256xf32, #tpu.memory_space<vmem>>, vector<1x4x256xf32>,
    return
  }
}

</mosaic_0001>

<bundles_post_ra>
// kernel: residual_forward.1
= control target key start
LH: loop header
LB: loop body
LE: loop exit
PB: predicated region body
PF: predicated region fallthrough
CT: control target
= control target key end

     0   :  { %vm54_vm0 = vcmask 1043456   ;;  %vm50_vm1 = vcmask 293888   ;;  %v780_v43 = vmov 0   ;;  %s783_s30 = smov 127   ;;  %s784_s9 = smov 113   ;;  %s1165_s0 = inlined_call_operand.vmem [shape: f32[36,512], index: 0, kind: input, shape index: {}]   ;;  %s1166_s1 = inlined_call_operand.vmem [shape: f32[4,36], index: 1, kind: input, shape index: {}]   ;;  %s1167_s2 = inlined_call_operand.vmem [shape: f32[4,1], index: 2, kind: input, shape index: {}]   ;;  %s1168_s3 = inlined_call_operand.vmem [shape: f32[4,1], index: 3, kind: input, shape index: {}]   ;;  %s1169_s7 = inlined_call_operand.vmem [shape: f32[9,512], index: 7, kind: input, shape index: {}]   ;;  %s1170_s4 = inlined_call_operand.vmem [shape: f32[4,36], index: 4, kind: input, shape index: {}]   ;;  %s1171_s5 = inlined_call_operand.vmem [shape: f32[4,1], index: 5, kind: input, shape index: {}]   ;;  %s1172_s6 = inlined_call_operand.vmem [shape: f32[4,1], index: 6, kind: input, shape index: {}]   ;;  %s1173_s8 = inlined_call_operand.vmem [shape: f32[2,4,256], index: 8, kind: output, shape index: {}]  }
   0x1   :  { %v48_v0 = vld [vmem:[%s1165_s0 + $0x90] sm:$0xf]  ;;  %v49_v2 = vld [vmem:[%s1165_s0 + $0x98] sm:$0xf]  ;;  %v46_v3 = vld [vmem:[%s1165_s0 + $0x80] sm:$0xf]  ;;  %774 = vset.pattern.permute.xlu1 %v780_v43  ;;  %775 = vset.pattern.permute.xlu0 %v780_v43 }
   0x2   :  { %v44_v1 = vld [vmem:[%s1165_s0 + $0x70] sm:$0xff]  ;;  %744 = vmatpush.msk.msra.mxu2 %vm54_vm0, %v48_v0  ;;  %746 = vmatpush.msk.msra.mxu3 %vm54_vm0, %v49_v2  ;;  %v47_v4 = vld [vmem:[%s1165_s0 + $0x88] sm:$0xf]  ;;  %v45_v6 = vld [vmem:[%s1165_s0 + $0x78] sm:$0xff]  ;;  %s785_s10 = smov 1   ;;  %s786_s11 = smov 15  }
   0x3   :  { %v40_v5 = vld [vmem:[%s1165_s0 + $0x50] sm:$0xff]  ;;  %740 = vmatpush.msk.msra.mxu0 %vm54_vm0, %v46_v3  ;;  %742 = vmatpush.msk.msra.mxu1 %vm54_vm0, %v47_v4  ;;  %v42_v7 = vld [vmem:[%s1165_s0 + $0x60] sm:$0xff]  ;;  %v43_v8 = vld [vmem:[%s1165_s0 + $0x68] sm:$0xff]  ;;  %s787_s12 = smov 16   ;;  %s788_s13 = smov 17  }
   0x4   :  { %119 = vmatpush.msra.mxu2 %v44_v1  ;;  %139 = vmatpush.msra.mxu3 %v45_v6  ;;  %v41_v9 = vld [vmem:[%s1165_s0 + $0x58] sm:$0xff]  ;;  %v38_v10 = vld [vmem:[%s1165_s0 + $0x40] sm:$0xff]  ;;  %v36_v11 = vld [vmem:[%s1165_s0 + $0x30] sm:$0xff] }
   0x5   :  { %79 = vmatpush.msra.mxu0 %v42_v7  ;;  %99 = vmatpush.msra.mxu1 %v43_v8  ;;  %v39_v12 = vld [vmem:[%s1165_s0 + $0x48] sm:$0xff]  ;;  %v37_v13 = vld [vmem:[%s1165_s0 + $0x38] sm:$0xff]  ;;  %v34_v14 = vld [vmem:[%s1165_s0 + $0x20] sm:$0xff] }
   0x6   :  { %120 = vmatpush.msra.mxu2 %v40_v5  ;;  %140 = vmatpush.msra.mxu3 %v41_v9  ;;  %v35_v15 = vld [vmem:[%s1165_s0 + $0x28] sm:$0xff]  ;;  %v32_v16 = vld [vmem:[%s1165_s0 + $0x10] sm:$0xff]  ;;  %v33_v17 = vld [vmem:[%s1165_s0 + $0x18] sm:$0xff] }
   0x7   :  { %80 = vmatpush.msra.mxu0 %v38_v10  ;;  %100 = vmatpush.msra.mxu1 %v39_v12  ;;  %v29_v18 = vld [vmem:[%s1166_s1] sm:$0xf]  ;;  %v31_v20 = vld [vmem:[%s1165_s0 + $0x8] sm:$0xff] }
   0x8   :  { %121 = vmatpush.msra.mxu2 %v36_v11  ;;  %141 = vmatpush.msra.mxu3 %v37_v13  ;;  %v30_v19 = vld [vmem:[%s1165_s0] sm:$0xff] }
   0x9   :  { %81 = vmatpush.msra.mxu0 %v34_v14  ;;  %101 = vmatpush.msra.mxu1 %v35_v15  ;;  %v173_v56 = vld [vmem:[%s1167_s2] sm:$0xf]  ;;  %v751_v0 = vld [vmem:[%s1169_s7 + $0x4] ss:$8 sm:$0xf]  ;;  %s781_s2 = smov 111  }
   0xa   :  { %122 = vmatpush.msra.mxu2 %v32_v16  ;;  %142 = vmatpush.msra.mxu3 %v33_v17  ;;  %v186_v61 = vld [vmem:[%s1168_s3] sm:$0xf]  ;;  %v369_v6 = vperm.slane %v751_v0, 2  ;;  %v370_v7 = vperm.slane %v751_v0, 3  ;;  %v367_v8 = vperm.slane %v751_v0, 0  ;;  %v368_v13 = vperm.slane %v751_v0, 1 }
   0xb   :  { %745 = vmatmul.msk.f32.vlgmr.msra.gmra.mxu2 %vm50_vm1, %v29_v18  ;;  %747 = vmatmul.msk.f32.vlgmr.msra.gmra.mxu3 %vm50_vm1, %v29_v18  ;;  %s782_s3 = smov 112  }
   0xc   :  { %82 = vmatpush.msra.mxu0 %v30_v19  ;;  %102 = vmatpush.msra.mxu1 %v31_v20 }
   0xd   :  { %741 = vmatmul.msk.f32.vlgmr.msra.gmra.mxu0 %vm50_vm1, %v29_v18  ;;  %743 = vmatmul.msk.f32.vlgmr.msra.gmra.mxu1 %vm50_vm1, %v29_v18 }
  0x8a   :  { %v84_v21 = vpop.f32.mrf.mxu0  ;;  %v104_v22 = vpop.f32.mrf.mxu1 }
  0x8b   :  { %v147_v23 = vsel %vm54_vm0, %v84_v21, 0.0  ;;  %v157_v24 = vmul.f32 %v84_v21, %v84_v21  ;;  %v148_v25 = vsel %vm54_vm0, %v104_v22, 0.0  ;;  %v158_v26 = vmul.f32 %v104_v22, %v104_v22 }
  0x8c   :  { %v149_v27 = vadd.f32 %v148_v25, %v147_v23  ;;  %v933_v25 = vld [vmem:[%s1169_s7 + $0x7] ss:$8 sm:$0xf] }
  0x8d   :  { %v161_v28 = vsel %vm54_vm0, %v157_v24, 0.0  ;;  %v162_v31 = vsel %vm54_vm0, %v158_v26, 0.0  ;;  %v477_v26 = vperm.slane %v933_v25, 2 }
  0x8e   :  { %v124_v29 = vpop.f32.mrf.mxu2  ;;  %v144_v30 = vpop.f32.mrf.mxu3  ;;  %v163_v37 = vadd.f32 %v162_v31, %v161_v28 }
  0x8f   :  { %v159_v32 = vmul.f32 %v124_v29, %v124_v29  ;;  %v150_v33 = vsel %vm54_vm0, %v124_v29, 0.0  ;;  %v152_v34 = vsel %vm54_vm0, %v144_v30, 0.0  ;;  %v160_v38 = vmul.f32 %v144_v30, %v144_v30 }
  0x90   :  { %v151_v35 = vadd.f32 %v150_v33, %v149_v27 }
  0x91   :  { %v164_v39 = vsel %vm54_vm0, %v159_v32, 0.0  ;;  %v166_v41 = vsel %vm54_vm0, %v160_v38, 0.0  ;;  %v755_v32 = vld [vmem:[%s1169_s7 + $0x20] ss:$8 sm:$0xf] }
  0x92   :  { %v153_v36 = vadd.f32 %v152_v34, %v151_v35  ;;  %v165_v40 = vadd.f32 %v164_v39, %v163_v37  ;;  %v521_v33 = vperm.slane %v755_v32, 2  ;;  %v953_v39 = vld [vmem:[%s1169_s7 + $0x5] ss:$8 sm:$0xf] }
  0x94   :  { %154 = vadd.xlane.f32.xlu0 %v153_v36  ;;  %v167_v42 = vadd.f32 %v166_v41, %v165_v40  ;;  %v401_v40 = vperm.slane %v953_v39, 2  ;;  %v522_v41 = vperm.slane %v755_v32, 3 }
  0x9c   :  { %168 = vadd.xlane.f32.xlu0 %v167_v42  ;;  %v478_v42 = vperm.slane %v933_v25, 3 }
 0x107   :  { %v155_v44 = vpop.xlane.xlu0 %154 }
 0x108   :  { %v156_v45 = vmul.f32 0.001953125, %v155_v44 }
 0x10a   :  { %v171_v47 = vmul.f32 %v156_v45, %v156_v45 }
 0x10f   :  { %v169_v46 = vpop.xlane.xlu0 %168 }
 0x110   :  { %v170_v48 = vmul.f32 0.001953125, %v169_v46 }
 0x112   :  { %v172_v49 = vsub.f32 %v170_v48, %v171_v47 }
 0x114   :  { %v174_v50 = vadd.f32 1e-05, %v172_v49 }
 0x116   :  { %776 = vrsqrt.f32 %v174_v50  ;;  %vm181_vm3 = vweird.f32 %v174_v50 }
 0x11c   :  { %v777_v51 = vpop.eup %776 }
 0x11d   :  { %v176_v52 = vmul.f32 %v777_v51, %v174_v50  ;;  %vm182_vm2 = vweird.f32 %v777_v51 }
 0x11e   :  { %vm183_vm4 = vmor %vm181_vm3, %vm182_vm2 }
 0x11f   :  { %v177_v53 = vmul.f32 %v777_v51, %v176_v52 }
 0x121   :  { %v178_v54 = vmul.f32 0.5, %v177_v53  ;;  %v968_v53 = vld [vmem:[%s1169_s7 + $0x6] ss:$8 sm:$0xf] }
 0x123   :  { %v179_v55 = vsub.f32 1.5, %v178_v54 }
 0x125   :  { %v180_v57 = vmul.f32 %v777_v51, %v179_v55 }
 0x127   :  { %v184_v58 = vsel %vm183_vm4, %v777_v51, %v180_v57  ;;  %v402_v57 = vperm.slane %v953_v39, 3 }
 0x128   :  { %v185_v59 = vmul.f32 %v184_v58, %v173_v56  ;;  %v445_v56 = vperm.slane %v968_v53, 2 }
 0x12a   :  { %191 = vperm.xlu1 %774, %v185_v59   ;;  %v187_v60 = vmul.f32 %v185_v59, %v156_v45 }
 0x12c   :  { %v188_v62 = vsub.f32 %v186_v61, %v187_v60 }
 0x132   :  { %200 = vperm.xlu1 %774, %v188_v62  }
 0x19c   :  { %v192_v63 = vpop.permute.xlu1 %191 }
 0x19d   :  { %v194_v1 = vmul.f32 %v192_v63, %v84_v21  ;;  %v195_v2 = vmul.f32 %v192_v63, %v104_v22  ;;  %v196_v3 = vmul.f32 %v192_v63, %v124_v29  ;;  %v197_v4 = vmul.f32 %v192_v63, %v144_v30 }
 0x19e   :  { %v219_v22 = vlaneseq }
 0x1a0   :  { %v928_v24 = vand.u32 127, %v219_v22 }
 0x1a2   :  { %vm467_vm5 = vcmp.lt.s32.totalorder %v928_v24, 112  ;;  %vm511_vm6 = vcmp.lt.s32.totalorder %v928_v24, 111  ;;  %vm391_vm7 = vcmp.lt.s32.totalorder %v928_v24, 127  ;;  %vm435_vm8 = vcmp.lt.s32.totalorder %v928_v24, 113 }
 0x1a3   :  { %vm328_vm9 = vcmp.lt.s32.totalorder %v928_v24, 1  ;;  %vm252_vm10 = vcmp.lt.s32.totalorder %v928_v24, 16  ;;  %vm296_vm11 = vcmp.lt.s32.totalorder %v928_v24, 15  ;;  %vm221_vm12 = vcmp.lt.s32.totalorder %v928_v24, 17 }
 0x1a4   :  { %v201_v5 = vpop.permute.xlu1 %200 }
 0x1a5   :  { %v203_v9 = vadd.f32 %v201_v5, %v194_v1  ;;  %v204_v10 = vadd.f32 %v201_v5, %v195_v2  ;;  %v205_v11 = vadd.f32 %v201_v5, %v196_v3  ;;  %v206_v12 = vadd.f32 %v201_v5, %v197_v4  ;;  %v987_v2 = vld [vmem:[%s1169_s7 + $0x3] ss:$8 sm:$0xf] }
 0x1a6   :  { %v338_v4 = vperm.slane %v987_v2, 2  ;;  %v519_v5 = vperm.slane %v755_v32, 0 }
 0x1a7   :  { %v207_v14 = vmax.f32 %v203_v9, 0.0  ;;  %v208_v15 = vmax.f32 %v204_v10, 0.0  ;;  %v209_v16 = vmax.f32 %v205_v11, 0.0  ;;  %v210_v17 = vmax.f32 %v206_v12, 0.0 }
 0x1a8   :  { %v475_v10 = vperm.slane %v933_v25, 0 }
 0x1a9   :  { %509 = vrot.lane.b32.xlu1 %v210_v17, %s781_s2  ;;  %507 = vrot.lane.b32.xlu0 %v209_v16, %s781_s2  ;;  %v377_v18 = vmul.f32 %v369_v6, %v209_v16  ;;  %v378_v19 = vmul.f32 %v370_v7, %v210_v17  ;;  %v375_v20 = vmul.f32 %v367_v8, %v207_v14  ;;  %v520_v6 = vperm.slane %v755_v32, 1 }
 0x1aa   :  { %463 = vrot.lane.b32.xlu2 %v209_v16, %s782_s3  ;;  %v376_v21 = vmul.f32 %v368_v13, %v208_v15  ;;  %v476_v7 = vperm.slane %v933_v25, 1 }
 0x1ab   :  { %381 = vst [vmem:[#allocation2 + $0x28] sm:$0xf] %v377_v18 }
 0x1ac   :  { %382 = vst [vmem:[#allocation2 + $0x40] sm:$0xf] %v378_v19 }
 0x1ad   :  { %379 = vst [vmem:[#allocation2 + $0x8] sm:$0xf] %v375_v20 }
 0x1ae   :  { %380 = vst [vmem:[#allocation2 + $0x88] sm:$0xf] %v376_v21 }
 0x1b1   :  { %389 = vrot.lane.b32.xlu1 %v210_v17, %s783_s30  ;;  %503 = vrot.lane.b32.xlu0 %v207_v14, %s781_s2 }
 0x1b2   :  { %465 = vrot.lane.b32.xlu2 %v210_v17, %s782_s3 }
 0x1b9   :  { %433 = vrot.lane.b32.xlu1 %v210_v17, %s784_s9  ;;  %383 = vrot.lane.b32.xlu0 %v207_v14, %s783_s30 }
 0x1ba   :  { %387 = vrot.lane.b32.xlu2 %v209_v16, %s783_s30 }
 0x1c1   :  { %322 = vrot.lane.b32.xlu1 %v208_v15, %s785_s10  ;;  %505 = vrot.lane.b32.xlu0 %v208_v15, %s781_s2 }
 0x1c2   :  { %431 = vrot.lane.b32.xlu2 %v209_v16, %s784_s9 }
 0x1c9   :  { %427 = vrot.lane.b32.xlu1 %v207_v14, %s784_s9  ;;  %290 = vrot.lane.b32.xlu0 %v208_v15, %s786_s11 }
 0x1ca   :  { %459 = vrot.lane.b32.xlu2 %v207_v14, %s782_s3 }
 0x1d1   :  { %246 = vrot.lane.b32.xlu1 %v208_v15, %s787_s12  ;;  %385 = vrot.lane.b32.xlu0 %v208_v15, %s783_s30 }
 0x1d2   :  { %324 = vrot.lane.b32.xlu2 %v209_v16, %s785_s10 }
 0x1d9   :  { %292 = vrot.lane.b32.xlu1 %v209_v16, %s786_s11  ;;  %215 = vrot.lane.b32.xlu0 %v209_v16, %s788_s13 }
 0x1da   :  { %461 = vrot.lane.b32.xlu2 %v208_v15, %s782_s3 }
 0x1e1   :  { %429 = vrot.lane.b32.xlu1 %v208_v15, %s784_s9  ;;  %320 = vrot.lane.b32.xlu0 %v207_v14, %s785_s10 }
 0x1e2   :  { %248 = vrot.lane.b32.xlu2 %v209_v16, %s787_s12 }
 0x1e9   :  { %250 = vrot.lane.b32.xlu1 %v210_v17, %s787_s12  ;;  %288 = vrot.lane.b32.xlu0 %v207_v14, %s786_s11 }
 0x1ea   :  { %326 = vrot.lane.b32.xlu2 %v210_v17, %s785_s10 }
 0x1f1   :  { %217 = vrot.lane.b32.xlu1 %v210_v17, %s788_s13 }
 0x1f2   :  { %213 = vrot.lane.b32.xlu2 %v208_v15, %s788_s13 }
 0x1f9   :  { %211 = vrot.lane.b32.xlu1 %v207_v14, %s788_s13 }
 0x1fa   :  { %294 = vrot.lane.b32.xlu2 %v210_v17, %s786_s11 }
 0x202   :  { %244 = vrot.lane.b32.xlu2 %v207_v14, %s787_s12 }
 0x204   :  { %v926_v23 = vpop.permute.xlu2 %463 }
 0x20c   :  { %v466_v27 = vpop.permute.xlu2 %465 }
 0x20d   :  { %v468_v28 = vsel %vm467_vm5, %v926_v23, %v466_v27 }
 0x20e   :  { %v485_v29 = vmul.f32 %v477_v26, %v468_v28 }
 0x210   :  { %v493_v30 = vrot.slane %v485_v29, 4  ;;  %v446_v29 = vperm.slane %v968_v53, 3 }
 0x212   :  { %501 = vst [vmem:[#allocation2 + $0x98] sm:$0xf0] %v493_v30 }
 0x214   :  { %v940_v31 = vpop.permute.xlu2 %387 }
 0x21b   :  { %v510_v34 = vpop.permute.xlu1 %509  ;;  %v508_v35 = vpop.permute.xlu0 %507 }
 0x21c   :  { %v512_v36 = vsel %vm511_vm6, %v508_v35, %v510_v34  ;;  %v948_v37 = vpop.permute.xlu2 %431 }
 0x21d   :  { %v529_v38 = vmul.f32 %v521_v33, %v512_v36  ;;  %v1022_v36 = vld [vmem:[%s1169_s7 + $0x1] ss:$8 sm:$0xf] }
 0x21f   :  { %533 = vst [vmem:[#allocation2 + $0x70] sm:$0xf] %v529_v38 }
 0x223   :  { %v390_v43 = vpop.permute.xlu1 %389  ;;  %v504_v44 = vpop.permute.xlu0 %503 }
 0x224   :  { %v392_v45 = vsel %vm391_vm7, %v940_v31, %v390_v43  ;;  %v515_v46 = vsel %vm511_vm6, %v510_v34, %v504_v44  ;;  %v460_v47 = vpop.permute.xlu2 %459 }
 0x225   :  { %v409_v48 = vmul.f32 %v401_v40, %v392_v45  ;;  %v530_v49 = vmul.f32 %v522_v41, %v515_v46  ;;  %v471_v50 = vsel %vm467_vm5, %v466_v27, %v460_v47  ;;  %v262_v40 = vperm.slane %v1022_v36, 2 }
 0x226   :  { %v486_v51 = vmul.f32 %v478_v42, %v471_v50  ;;  %v554_v52 = vld [vmem:[#allocation2 + $0x70] sm:$0xf]  ;;  %v399_v41 = vperm.slane %v953_v39, 0  ;;  %v400_v42 = vperm.slane %v953_v39, 1 }
 0x227   :  { %v417_v54 = vrot.slane %v409_v48, 4  ;;  %534 = vst [vmem:[#allocation2 + $0x90] sm:$0xf] %v530_v49  ;;  %760 = vmatpush.msk.msrb.mxu2 %vm54_vm0, %v554_v52 }
 0x228   :  { %v494_v55 = vrot.slane %v486_v51, 4 }
 0x229   :  { %425 = vst [vmem:[#allocation2 + $0x28] sm:$0xf0] %v417_v54 }
 0x22a   :  { %502 = vst [vmem:[#allocation2 + $0x60] sm:$0xf0] %v494_v55 }
 0x22b   :  { %v434_v58 = vpop.permute.xlu1 %433  ;;  %v974_v59 = vpop.permute.xlu0 %383 }
 0x22c   :  { %v436_v60 = vsel %vm435_vm8, %v948_v37, %v434_v58  ;;  %v395_v61 = vsel %vm391_vm7, %v390_v43, %v974_v59  ;;  %v982_v62 = vpop.permute.xlu2 %324  ;;  %v339_v43 = vperm.slane %v987_v2, 3 }
 0x22d   :  { %v453_v63 = vmul.f32 %v445_v56, %v436_v60  ;;  %v410_v0 = vmul.f32 %v402_v57, %v395_v61  ;;  %v1049_v56 = vld [vmem:[%s1169_s7 + $0x2] ss:$8 sm:$0xf] }
 0x22e   :  { %v555_v1 = vld [vmem:[#allocation2 + $0x90] sm:$0xf] }
 0x22f   :  { %457 = vst [vmem:[#allocation2 + $0x98] sm:$0xf] %v453_v63  ;;  %v418_v3 = vrot.slane %v410_v0, 4  ;;  %762 = vmatpush.msk.msrb.mxu3 %vm54_vm0, %v555_v1 }
 0x230   :  { %v546_v27 = vld [vmem:[#allocation2 + $0x28] sm:$0xff] }
 0x231   :  { %426 = vst [vmem:[#allocation2 + $0x40] sm:$0xf0] %v418_v3 }
 0x233   :  { %v993_v8 = vpop.permute.xlu1 %322  ;;  %v506_v9 = vpop.permute.xlu0 %505 }
 0x234   :  { %v330_v11 = vsel %vm328_vm9, %v993_v8, %v982_v62  ;;  %v513_v12 = vsel %vm511_vm6, %v506_v9, %v508_v35  ;;  %v514_v13 = vsel %vm511_vm6, %v504_v44, %v506_v9  ;;  %v462_v14 = vpop.permute.xlu2 %461  ;;  %v443_v9 = vperm.slane %v968_v53, 0 }
 0x235   :  { %v346_v15 = vmul.f32 %v338_v4, %v330_v11  ;;  %v527_v16 = vmul.f32 %v519_v5, %v514_v13  ;;  %v528_v17 = vmul.f32 %v520_v6, %v513_v12  ;;  %v469_v18 = vsel %vm467_vm5, %v462_v14, %v926_v23 }
 0x236   :  { %v470_v19 = vsel %vm467_vm5, %v460_v47, %v462_v14  ;;  %v484_v20 = vmul.f32 %v476_v7, %v469_v18  ;;  %v550_v21 = vld [vmem:[#allocation2 + $0x98] sm:$0xff]  ;;  %v336_v11 = vperm.slane %v987_v2, 0  ;;  %v337_v12 = vperm.slane %v987_v2, 1 }
 0x237   :  { %v354_v22 = vrot.slane %v346_v15, 4  ;;  %531 = vst [vmem:[#allocation2 + $0x20] sm:$0xf] %v527_v16  ;;  %v483_v25 = vmul.f32 %v475_v10, %v470_v19  ;;  %623 = vmatpush.msrb.mxu2 %v550_v21  ;;  %v444_v10 = vperm.slane %v968_v53, 1  ;;  %v307_v15 = vperm.slane %v1049_v56, 3 }
 0x238   :  { %532 = vst [vmem:[#allocation2 + $0x48] sm:$0xf] %v528_v17  ;;  %v492_v26 = vrot.slane %v484_v20, 4  ;;  %v547_v61 = vld [vmem:[#allocation2 + $0x40] sm:$0xff] }
 0x239   :  { %362 = vst [vmem:[#allocation2 + $0x78] sm:$0xf0] %v354_v22  ;;  %v491_v28 = vrot.slane %v483_v25, 4  ;;  %624 = vmatpush.msrb.mxu2 %v546_v27 }
 0x23a   :  { %500 = vst [vmem:[#allocation2 + $0x10] sm:$0xf0] %v492_v26 }
 0x23b   :  { %499 = vst [vmem:[#allocation2 + $0x58] sm:$0xf0] %v491_v28  ;;  %v1010_v23 = vpop.permute.xlu1 %427  ;;  %v1012_v30 = vpop.permute.xlu0 %290 }
 0x23c   :  { %v439_v32 = vsel %vm435_vm8, %v434_v58, %v1010_v23  ;;  %v1017_v33 = vpop.permute.xlu2 %248 }
 0x23d   :  { %v454_v34 = vmul.f32 %v446_v29, %v439_v32  ;;  %v304_v32 = vperm.slane %v1049_v56, 0 }
 0x23e   :  { %v552_v35 = vld [vmem:[#allocation2 + $0x20] sm:$0xf] }
 0x23f   :  { %458 = vst [vmem:[#allocation2 + $0x60] sm:$0xf] %v454_v34  ;;  %756 = vmatpush.msk.msrb.mxu0 %vm54_vm0, %v552_v35  ;;  %v553_v38 = vld [vmem:[#allocation2 + $0x48] sm:$0xf]  ;;  %v305_v34 = vperm.slane %v1049_v56, 1  ;;  %v261_v35 = vperm.slane %v1022_v36, 1 }
 0x240   :  { %758 = vmatpush.msk.msrb.mxu1 %vm54_vm0, %v553_v38 }
 0x243   :  { %v1031_v44 = vpop.permute.xlu1 %246  ;;  %v386_v45 = vpop.permute.xlu0 %385 }
 0x244   :  { %v254_v46 = vsel %vm252_vm10, %v1031_v44, %v1017_v33  ;;  %v393_v47 = vsel %vm391_vm7, %v386_v45, %v940_v31  ;;  %v394_v48 = vsel %vm391_vm7, %v974_v59, %v386_v45  ;;  %v327_v49 = vpop.permute.xlu2 %326  ;;  %v1054_v59 = vld [vmem:[%s1169_s7] ss:$8 sm:$0xf] }
 0x245   :  { %v270_v39 = vmul.f32 %v262_v40, %v254_v46  ;;  %v407_v50 = vmul.f32 %v399_v41, %v394_v48  ;;  %v408_v51 = vmul.f32 %v400_v42, %v393_v47  ;;  %v329_v52 = vsel %vm328_vm9, %v982_v62, %v327_v49 }
 0x246   :  { %v347_v54 = vmul.f32 %v339_v43, %v329_v52  ;;  %v551_v55 = vld [vmem:[#allocation2 + $0x60] sm:$0xff]  ;;  %v306_v62 = vperm.slane %v1049_v56, 2  ;;  %v230_v63 = vperm.slane %v1054_v59, 2  ;;  %v260_v41 = vperm.slane %v1022_v36, 0 }
 0x247   :  { %v278_v31 = vrot.slane %v270_v39, 4  ;;  %v415_v57 = vrot.slane %v407_v50, 4  ;;  %v416_v58 = vrot.slane %v408_v51, 4  ;;  %643 = vmatpush.msrb.mxu3 %v551_v55 }
 0x248   :  { %v355_v60 = vrot.slane %v347_v54, 4 }
 0x249   :  { %286 = vst [vmem:[#allocation2 + $0x50] sm:$0xf0] %v278_v31  ;;  %644 = vmatpush.msrb.mxu3 %v547_v61 }
 0x24a   :  { %423 = vst [vmem:[#allocation2 + $0x8] sm:$0xf0] %v415_v57 }
 0x24b   :  { %424 = vst [vmem:[#allocation2 + $0x88] sm:$0xf0] %v416_v58  ;;  %v293_v0 = vpop.permute.xlu1 %292  ;;  %v1060_v1 = vpop.permute.xlu0 %215 }
 0x24c   :  { %363 = vst [vmem:[#allocation2 + $0x80] sm:$0xf0] %v355_v60  ;;  %v298_v3 = vsel %vm296_vm11, %v1012_v30, %v293_v0  ;;  %v1065_v4 = vpop.permute.xlu2 %213 }
 0x24d   :  { %v314_v5 = vmul.f32 %v306_v62, %v298_v3  ;;  %v223_v6 = vsel %vm221_vm12, %v1065_v4, %v1060_v1  ;;  %v229_v3 = vperm.slane %v1054_v59, 1 }
 0x24e   :  { %v238_v7 = vmul.f32 %v230_v63, %v223_v6 }
 0x24f   :  { %318 = vst [vmem:[#allocation2 + $0x78] sm:$0xf] %v314_v5 }
 0x250   :  { %242 = vst [vmem:[#allocation2 + $0x50] sm:$0xf] %v238_v7 }
 0x251   :  { %v544_v55 = vld [vmem:[#allocation2 + $0x8] sm:$0xff] }
 0x252   :  { %v545_v31 = vld [vmem:[#allocation2 + $0x88] sm:$0xff] }
 0x253   :  { %v430_v13 = vpop.permute.xlu1 %429  ;;  %v321_v14 = vpop.permute.xlu0 %320 }
 0x254   :  { %v437_v16 = vsel %vm435_vm8, %v430_v13, %v948_v37  ;;  %v438_v17 = vsel %vm435_vm8, %v1010_v23, %v430_v13  ;;  %v331_v53 = vsel %vm328_vm9, %v321_v14, %v993_v8  ;;  %v332_v18 = vsel %vm328_vm9, %v327_v49, %v321_v14  ;;  %v295_v2 = vpop.permute.xlu2 %294  ;;  %v1092_v8 = vld [vmem:[%s1170_s4] sm:$0xf] }
 0x255   :  { %v451_v19 = vmul.f32 %v443_v9, %v438_v17  ;;  %v452_v20 = vmul.f32 %v444_v10, %v437_v16  ;;  %v344_v21 = vmul.f32 %v336_v11, %v332_v18  ;;  %v345_v22 = vmul.f32 %v337_v12, %v331_v53 }
 0x256   :  { %v297_v25 = vsel %vm296_vm11, %v293_v0, %v295_v2  ;;  %v542_v37 = vld [vmem:[#allocation2 + $0x78] sm:$0xff]  ;;  %v263_v23 = vperm.slane %v1022_v36, 3  ;;  %v228_v0 = vperm.slane %v1054_v59, 0 }
 0x257   :  { %455 = vst [vmem:[#allocation2 + $0x58] sm:$0xf] %v451_v19  ;;  %v352_v26 = vrot.slane %v344_v21, 4  ;;  %v353_v27 = vrot.slane %v345_v22, 4  ;;  %v315_v28 = vmul.f32 %v307_v15, %v297_v25  ;;  %625 = vmatpush.msrb.mxu2 %v542_v37  ;;  %v538_v29 = vld [vmem:[#allocation2 + $0x50] sm:$0xff] }
 0x258   :  { %456 = vst [vmem:[#allocation2 + $0x10] sm:$0xf] %v452_v20 }
 0x259   :  { %360 = vst [vmem:[#allocation2 + $0x30] sm:$0xf0] %v352_v26  ;;  %626 = vmatpush.msrb.mxu2 %v538_v29 }
 0x25a   :  { %361 = vst [vmem:[#allocation2 + $0x68] sm:$0xf0] %v353_v27  ;;  %761 = vmatmul.msk.f32.vlgmr.msrb.gmra.mxu2 %vm50_vm1, %v1092_v8 }
 0x25b   :  { %319 = vst [vmem:[#allocation2 + $0x80] sm:$0xf] %v315_v28  ;;  %v251_v38 = vpop.permute.xlu1 %250  ;;  %v289_v40 = vpop.permute.xlu0 %288 }
 0x25c   :  { %v253_v42 = vsel %vm252_vm10, %v1017_v33, %v251_v38  ;;  %v299_v43 = vsel %vm296_vm11, %v289_v40, %v1012_v30  ;;  %v300_v45 = vsel %vm296_vm11, %v295_v2, %v289_v40  ;;  %v245_v46 = vpop.permute.xlu2 %244 }
 0x25d   :  { %v271_v47 = vmul.f32 %v263_v23, %v253_v42  ;;  %v312_v48 = vmul.f32 %v304_v32, %v300_v45  ;;  %v313_v49 = vmul.f32 %v305_v34, %v299_v43  ;;  %v255_v39 = vsel %vm252_vm10, %v245_v46, %v1031_v44 }
 0x25e   :  { %v256_v36 = vsel %vm252_vm10, %v251_v38, %v245_v46  ;;  %v269_v50 = vmul.f32 %v261_v35, %v255_v39  ;;  %v548_v33 = vld [vmem:[#allocation2 + $0x58] sm:$0xff]  ;;  %v231_v44 = vperm.slane %v1054_v59, 3 }
 0x25f   :  { %v279_v51 = vrot.slane %v271_v47, 4  ;;  %316 = vst [vmem:[#allocation2 + $0x30] sm:$0xf] %v312_v48  ;;  %v268_v52 = vmul.f32 %v260_v41, %v256_v36  ;;  %583 = vmatpush.msrb.mxu0 %v548_v33  ;;  %v549_v30 = vld [vmem:[#allocation2 + $0x10] sm:$0xff]  ;;  %v677_v48 = vld [vmem:[%s1171_s5] sm:$0xf] }
 0x260   :  { %317 = vst [vmem:[#allocation2 + $0x68] sm:$0xf] %v313_v49  ;;  %v277_v54 = vrot.slane %v269_v50, 4  ;;  %603 = vmatpush.msrb.mxu1 %v549_v30  ;;  %v690_v33 = vld [vmem:[%s1172_s6] sm:$0xf] }
 0x261   :  { %287 = vst [vmem:[#allocation2 + $0x18] sm:$0xf0] %v279_v51  ;;  %v276_v56 = vrot.slane %v268_v52, 4  ;;  %584 = vmatpush.msrb.mxu0 %v544_v55 }
 0x262   :  { %285 = vst [vmem:[#allocation2 + $0x38] sm:$0xf0] %v277_v54  ;;  %v543_v57 = vld [vmem:[#allocation2 + $0x80] sm:$0xff]  ;;  %604 = vmatpush.msrb.mxu1 %v545_v31 }
 0x263   :  { %284 = vst [vmem:[#allocation2] sm:$0xf0] %v276_v56  ;;  %645 = vmatpush.msrb.mxu3 %v543_v57  ;;  %v218_v58 = vpop.permute.xlu1 %217  ;;  %v711_v31 = vld [vmem:[%s1165_s0 + $0x40] sm:$0xf]  ;;  %v713_v57 = vld [vmem:[%s1165_s0 + $0x50] sm:$0xf] }
 0x264   :  { %v222_v60 = vsel %vm221_vm12, %v1060_v1, %v218_v58 }
 0x265   :  { %v239_v61 = vmul.f32 %v231_v44, %v222_v60  ;;  %v712_v44 = vld [vmem:[%s1165_s0 + $0x48] sm:$0xf] }
 0x266   :  { %v540_v62 = vld [vmem:[#allocation2 + $0x30] sm:$0xff] }
 0x267   :  { %243 = vst [vmem:[#allocation2 + $0x18] sm:$0xf] %v239_v61  ;;  %585 = vmatpush.msrb.mxu0 %v540_v62  ;;  %v541_v63 = vld [vmem:[#allocation2 + $0x68] sm:$0xff] }
 0x268   :  { %605 = vmatpush.msrb.mxu1 %v541_v63 }
 0x26b   :  { %v212_v5 = vpop.permute.xlu1 %211 }
 0x26c   :  { %v224_v6 = vsel %vm221_vm12, %v212_v5, %v1065_v4  ;;  %v225_v7 = vsel %vm221_vm12, %v218_v58, %v212_v5  ;;  %v714_v58 = vld [vmem:[%s1165_s0 + $0x58] sm:$0xf] }
 0x26d   :  { %v236_v9 = vmul.f32 %v228_v0, %v225_v7  ;;  %v237_v1 = vmul.f32 %v229_v3, %v224_v6 }
 0x26e   :  { %v539_v10 = vld [vmem:[#allocation2 + $0x18] sm:$0xff] }
 0x26f   :  { %240 = vst [vmem:[#allocation2] sm:$0xf] %v236_v9  ;;  %646 = vmatpush.msrb.mxu3 %v539_v10 }
 0x270   :  { %241 = vst [vmem:[#allocation2 + $0x38] sm:$0xf] %v237_v1  ;;  %763 = vmatmul.msk.f32.vlgmr.msrb.gmra.mxu3 %vm50_vm1, %v1092_v8 }
 0x276   :  { %v536_v11 = vld [vmem:[#allocation2] sm:$0xff] }
 0x277   :  { %586 = vmatpush.msrb.mxu0 %v536_v11  ;;  %v537_v59 = vld [vmem:[#allocation2 + $0x38] sm:$0xff] }
 0x278   :  { %606 = vmatpush.msrb.mxu1 %v537_v59  ;;  %757 = vmatmul.msk.f32.vlgmr.msrb.gmra.mxu0 %vm50_vm1, %v1092_v8 }
 0x279   :  { %759 = vmatmul.msk.f32.vlgmr.msrb.gmra.mxu1 %vm50_vm1, %v1092_v8 }
 0x2dd   :  { %v628_v24 = vpop.f32.mrf.mxu2 }
 0x2de   :  { %v663_v13 = vmul.f32 %v628_v24, %v628_v24  ;;  %v654_v18 = vsel %vm54_vm0, %v628_v24, 0.0 }
 0x2e0   :  { %v668_v22 = vsel %vm54_vm0, %v663_v13, 0.0 }
 0x2f3   :  { %v648_v4 = vpop.f32.mrf.mxu3 }
 0x2f4   :  { %v664_v2 = vmul.f32 %v648_v4, %v648_v4  ;;  %v656_v25 = vsel %vm54_vm0, %v648_v4, 0.0 }
 0x2f5   :  { %v588_v12 = vpop.f32.mrf.mxu0 }
 0x2f6   :  { %v651_v14 = vsel %vm54_vm0, %v588_v12, 0.0  ;;  %v661_v15 = vmul.f32 %v588_v12, %v588_v12  ;;  %v608_v16 = vpop.f32.mrf.mxu1  ;;  %v670_v27 = vsel %vm54_vm0, %v664_v2, 0.0 }
 0x2f7   :  { %v652_v17 = vsel %vm54_vm0, %v608_v16, 0.0  ;;  %v662_v53 = vmul.f32 %v608_v16, %v608_v16 }
 0x2f8   :  { %v665_v19 = vsel %vm54_vm0, %v661_v15, 0.0  ;;  %v653_v20 = vadd.f32 %v652_v17, %v651_v14 }
 0x2f9   :  { %v666_v21 = vsel %vm54_vm0, %v662_v53, 0.0 }
 0x2fa   :  { %v667_v37 = vadd.f32 %v666_v21, %v665_v19  ;;  %v655_v26 = vadd.f32 %v654_v18, %v653_v20 }
 0x2fc   :  { %v657_v28 = vadd.f32 %v656_v25, %v655_v26  ;;  %v669_v8 = vadd.f32 %v668_v22, %v667_v37 }
 0x2fe   :  { %658 = vadd.xlane.f32.xlu2 %v657_v28  ;;  %v671_v29 = vadd.f32 %v670_v27, %v669_v8 }
 0x300   :  { %672 = vadd.xlane.f32.xlu0 %v671_v29 }
 0x371   :  { %v659_v23 = vpop.xlane.xlu2 %658 }
 0x372   :  { %v660_v32 = vmul.f32 0.001953125, %v659_v23 }
 0x373   :  { %v673_v34 = vpop.xlane.xlu0 %672 }
 0x374   :  { %v675_v35 = vmul.f32 %v660_v32, %v660_v32  ;;  %v674_v38 = vmul.f32 0.001953125, %v673_v34 }
 0x376   :  { %v676_v40 = vsub.f32 %v674_v38, %v675_v35 }
 0x378   :  { %v678_v41 = vadd.f32 1e-05, %v676_v40 }
 0x37a   :  { %778 = vrsqrt.f32 %v678_v41  ;;  %vm685_vm14 = vweird.f32 %v678_v41 }
 0x380   :  { %v779_v42 = vpop.eup %778 }
 0x381   :  { %v680_v43 = vmul.f32 %v779_v42, %v678_v41  ;;  %vm686_vm13 = vweird.f32 %v779_v42 }
 0x382   :  { %vm687_vm15 = vmor %vm685_vm14, %vm686_vm13 }
 0x383   :  { %v681_v45 = vmul.f32 %v779_v42, %v680_v43 }
 0x385   :  { %v682_v46 = vmul.f32 0.5, %v681_v45 }
 0x387   :  { %v683_v47 = vsub.f32 1.5, %v682_v46 }
 0x389   :  { %v684_v49 = vmul.f32 %v779_v42, %v683_v47 }
 0x38b   :  { %v688_v39 = vsel %vm687_vm15, %v779_v42, %v684_v49 }
 0x38c   :  { %v689_v36 = vmul.f32 %v688_v39, %v677_v48 }
 0x38e   :  { %695 = vperm.xlu1 %774, %v689_v36   ;;  %v691_v50 = vmul.f32 %v689_v36, %v660_v32 }
 0x390   :  { %v692_v51 = vsub.f32 %v690_v33, %v691_v50 }
 0x396   :  { %704 = vperm.xlu1 %774, %v692_v51  }
 0x400   :  { %v696_v52 = vpop.permute.xlu1 %695 }
 0x401   :  { %v698_v30 = vmul.f32 %v696_v52, %v588_v12  ;;  %v699_v54 = vmul.f32 %v696_v52, %v608_v16  ;;  %v700_v55 = vmul.f32 %v696_v52, %v628_v24  ;;  %v701_v56 = vmul.f32 %v696_v52, %v648_v4 }
 0x408   :  { %v705_v60 = vpop.permute.xlu1 %704 }
 0x409   :  { %v707_v61 = vadd.f32 %v705_v60, %v698_v30  ;;  %v708_v62 = vadd.f32 %v705_v60, %v699_v54  ;;  %v709_v63 = vadd.f32 %v705_v60, %v700_v55  ;;  %v710_v0 = vadd.f32 %v705_v60, %v701_v56 }
 0x40b   :  { %v715_v3 = vadd.f32 %v711_v31, %v707_v61  ;;  %v716_v5 = vadd.f32 %v712_v44, %v708_v62  ;;  %v717_v6 = vadd.f32 %v713_v57, %v709_v63  ;;  %v718_v7 = vadd.f32 %v714_v58, %v710_v0 }
 0x40d   :  { %v720_v9 = vmax.f32 %v716_v5, 0.0  ;;  %v722_v1 = vmax.f32 %v718_v7, 0.0  ;;  %v719_v10 = vmax.f32 %v715_v3, 0.0  ;;  %v721_v11 = vmax.f32 %v717_v6, 0.0 }
 0x40f   :  { %v725_v59 = vrot.slane %v720_v9, 4  ;;  %v731_v24 = vrot.slane %v722_v1, 4 }
 0x411   :  { %v726_v4 = vsel %vm54_vm0, %v719_v10, %v725_v59  ;;  %v732_v12 = vsel %vm54_vm0, %v721_v11, %v731_v24 }
 0x412   :  { %728 = vst [vmem:[%s1173_s8] sm:$0xff] %v726_v4 }
 0x413   :  { %764 = vst [vmem:[%s1173_s8 + $0x8] sm:$0xff] %v732_v12 }

</bundles_post_ra>
